<compile_context>
chip_gen: v5e
topology: v5e:2x2
jax: 0.10.0
libtpu: 0.0.40
codegen_flags: <defaults>
</compile_context>

<pallas_src>
import functools

import jax
import jax.numpy as jnp
from jax.experimental import pallas as pl
from jax.experimental.pallas import tpu as pltpu


# ---------------------------------------------------------------------------
# Pass 1: spatial pooling (running max + running sum per (B, C) row)
# ---------------------------------------------------------------------------
def _pool_kernel(x_ref, max_ref, sum_ref, max_acc, sum_acc,
                 *, s_valid, s_tile, needs_mask):
    # x_ref: (1, C_TILE, S_TILE) block of x.
    # max_ref/sum_ref: (1, C_TILE, 1) per-(sample, channel-tile) outputs.
    # max_acc/sum_acc: (C_TILE, 128) f32 VMEM scratch, resident across S tiles.
    s = pl.program_id(2)
    n_s = pl.num_programs(2)

    @pl.when(s == 0)
    def _init():
        max_acc[...] = jnp.full(max_acc.shape, -jnp.inf, max_acc.dtype)
        sum_acc[...] = jnp.zeros(sum_acc.shape, sum_acc.dtype)

    n_chunks = s_tile // 128
    unroll = min(8, n_chunks)

    def _accumulate(masked):
        def body(k, carry):
            m, a = carry
            start = pl.multiple_of(k * 128, 128)
            chunk = x_ref[0, :, pl.ds(start, 128)].astype(jnp.float32)
            if masked:
                # Ragged trailing block: out-of-bounds lanes hold unspecified
                # data, so mask both the max and the sum paths.
                lane = (jax.lax.broadcasted_iota(jnp.int32, chunk.shape, 1)
                        + start + s * s_tile)
                valid = lane < s_valid
                m = jnp.maximum(m, jnp.where(valid, chunk, -jnp.inf))
                a = a + jnp.where(valid, chunk, 0.0)
            else:
                m = jnp.maximum(m, chunk)
                a = a + chunk
            return m, a

        m, a = jax.lax.fori_loop(0, n_chunks, body,
                                 (max_acc[...], sum_acc[...]), unroll=unroll)
        max_acc[...] = m
        sum_acc[...] = a

    if needs_mask:
        # Only the last S tile pays for the iota/compare/select.
        @pl.when(s == n_s - 1)
        def _last():
            _accumulate(True)

        @pl.when(s != n_s - 1)
        def _rest():
            _accumulate(False)
    else:
        _accumulate(False)

    @pl.when(s == n_s - 1)
    def _finalize():
        max_ref[...] = jnp.max(max_acc[...], axis=1, keepdims=True)[None]
        sum_ref[...] = jnp.sum(sum_acc[...], axis=1, keepdims=True)[None]


# ---------------------------------------------------------------------------
# Pass 2: broadcasted channel scale  y = x * att[b, c]
# ---------------------------------------------------------------------------
def _scale_kernel(x_ref, att_ref, o_ref):
    # x_ref: (1, C, S_TILE), att_ref: (1, C, 1)  -> broadcast along lanes.
    o_ref[...] = (x_ref[...] * att_ref[...]).astype(o_ref.dtype)


# ---------------------------------------------------------------------------
# Tile / VMEM sizing helpers
# ---------------------------------------------------------------------------
def _vmem_limit_bytes():
    """Generation-aware scoped-VMEM limit (128 MiB v5e/v6e, 64 MiB v7x)."""
    try:
        cap = int(pltpu.get_tpu_info().vmem_capacity_bytes)
    except Exception:
        cap = 64 * 1024 * 1024  # conservative fallback (v7x physical)
    return min(cap * 3 // 4, 96 * 1024 * 1024)


def _pick_s_tile(c_rows, S, itemsize, block_budget):
    """Lane tile: multiple of 128, sized so one (c_rows, S_TILE) block fits budget."""
    s128 = 128 * pl.cdiv(S, 128)                 # S rounded up to a lane multiple
    bytes_per_lane = max(1, c_rows * itemsize)
    max_tile = max(128, (block_budget // bytes_per_lane) // 128 * 128)
    return int(min(s128, max_tile))


# ---------------------------------------------------------------------------
# Wrapper
# ---------------------------------------------------------------------------
def gl_channel_attention(x_nchw, w1, b1, w2, b2):
    """x_nchw: (B, C, H, W). w1: (C, C//r), b1: (C//r,), w2: (C//r, C), b2: (C,)."""
    B, C, H, W = x_nchw.shape
    S = H * W
    x3 = x_nchw.reshape(B, C, S)
    itemsize = int(jnp.dtype(x_nchw.dtype).itemsize)

    vmem_limit = _vmem_limit_bytes()

    # ---- pass 1: pooling ----------------------------------------------------
    c_tile = C if C <= 128 else 128              # keep accumulators <= ~32 vregs
    num_c = pl.cdiv(C, c_tile)
    s_tile1 = _pick_s_tile(c_tile, S, itemsize,
                           min(vmem_limit // 4, 16 * 1024 * 1024))
    num_s1 = pl.cdiv(S, s_tile1)
    needs_mask = (num_s1 * s_tile1) != S

    max_bc1, sum_bc1 = pl.pallas_call(
        functools.partial(_pool_kernel, s_valid=S, s_tile=s_tile1,
                          needs_mask=needs_mask),
        out_shape=(jax.ShapeDtypeStruct((B, C, 1), jnp.float32),
                   jax.ShapeDtypeStruct((B, C, 1), jnp.float32)),
        grid=(B, num_c, num_s1),
        in_specs=[pl.BlockSpec((1, c_tile, s_tile1), lambda b, c, s: (b, c, s))],
        out_specs=(pl.BlockSpec((1, c_tile, 1), lambda b, c, s: (b, c, 0)),
                   pl.BlockSpec((1, c_tile, 1), lambda b, c, s: (b, c, 0))),
        scratch_shapes=[pltpu.VMEM((c_tile, 128), jnp.float32),
                        pltpu.VMEM((c_tile, 128), jnp.float32)],
        compiler_params=pltpu.CompilerParams(
            dimension_semantics=("parallel", "parallel", "arbitrary"),
            vmem_limit_bytes=vmem_limit),
        cost_estimate=pl.CostEstimate(
            flops=2 * B * C * S,
            transcendentals=0,
            bytes_accessed=B * C * S * itemsize + 2 * B * C * 4),
    )(x3)

    # ---- tiny shared MLP in plain JAX (far too small for the MXU) ------------
    max_bc = max_bc1[:, :, 0]                              # (B, C)
    avg_bc = sum_bc1[:, :, 0] / jnp.float32(S)             # (B, C)
    max_c = jnp.max(max_bc, axis=0, keepdims=True)         # (1, C) max of maxes
    avg_c = jnp.mean(avg_bc, axis=0, keepdims=True)        # (1, C) mean of means

    feats = jnp.concatenate([max_bc, avg_bc, max_c, avg_c], axis=0)   # (2B+2, C)
    h = jnp.maximum(feats @ w1.astype(jnp.float32) + b1.astype(jnp.float32), 0.0)
    out = h @ w2.astype(jnp.float32) + b2.astype(jnp.float32)
    att = (out[0:B]                      # MLP(max per-sample)
           + out[B:2 * B]                # MLP(mean per-sample)
           + out[2 * B:2 * B + 1]        # MLP(max global), broadcast over B
           + out[2 * B + 1:2 * B + 2])   # MLP(mean global), broadcast over B
    att = jax.nn.sigmoid(att).astype(x_nchw.dtype)[:, :, None]        # (B, C, 1)

    # ---- pass 2: scale (no pad, no trailing slice) ----------------------------
    s_tile2 = _pick_s_tile(C, S, itemsize,
                           min(vmem_limit // 8, 8 * 1024 * 1024))
    num_s2 = pl.cdiv(S, s_tile2)

    y3 = pl.pallas_call(
        _scale_kernel,
        out_shape=jax.ShapeDtypeStruct((B, C, S), x_nchw.dtype),
        grid=(B, num_s2),
        in_specs=[pl.BlockSpec((1, C, s_tile2), lambda b, s: (b, 0, s)),
                  pl.BlockSpec((1, C, 1), lambda b, s: (b, 0, 0))],
        out_specs=pl.BlockSpec((1, C, s_tile2), lambda b, s: (b, 0, s)),
        compiler_params=pltpu.CompilerParams(
            dimension_semantics=("parallel", "parallel"),
            vmem_limit_bytes=vmem_limit),
        cost_estimate=pl.CostEstimate(
            flops=B * C * S,
            transcendentals=0,
            bytes_accessed=2 * B * C * S * itemsize + B * C * itemsize),
    )(x3, att)

    return y3.reshape(B, C, H, W)


# ---------------------------------------------------------------------------
# Pure-JAX reference for validation
# ---------------------------------------------------------------------------
def _reference(x, w1, b1, w2, b2):
    max_bc = jnp.max(x, axis=(2, 3))
    avg_bc = jnp.mean(x, axis=(2, 3))
    max_c = jnp.max(x, axis=(0, 2, 3))[None, :]
    avg_c = jnp.mean(x, axis=(0, 2, 3))[None, :]

    def mlp(a):
        h = jnp.maximum(a @ w1 + b1, 0.0)
        return h @ w2 + b2

    att = mlp(max_bc) + mlp(avg_bc) + mlp(max_c) + mlp(avg_c)
    att = jax.nn.sigmoid(att)
    return x * att[:, :, None, None]


if __name__ == "__main__":
    key = jax.random.PRNGKey(0)
    B, C, H, W = 2, 32, 16, 16
    reduction = 16
    Ch = C // reduction  # hidden = 2

    k_x, k_w1, k_b1, k_w2, k_b2 = jax.random.split(key, 5)
    x = jax.random.normal(k_x, (B, C, H, W), dtype=jnp.float32)

    # deterministic PyTorch-Linear-style init: uniform(-1/sqrt(fan_in), 1/sqrt(fan_in))
    bnd1 = 1.0 / (C ** 0.5)
    bnd2 = 1.0 / (Ch ** 0.5)
    w1 = jax.random.uniform(k_w1, (C, Ch), jnp.float32, -bnd1, bnd1)
    b1 = jax.random.uniform(k_b1, (Ch,), jnp.float32, -bnd1, bnd1)
    w2 = jax.random.uniform(k_w2, (Ch, C), jnp.float32, -bnd2, bnd2)
    b2 = jax.random.uniform(k_b2, (C,), jnp.float32, -bnd2, bnd2)

    fwd = jax.jit(gl_channel_attention)
    y = fwd(x, w1, b1, w2, b2)
    jax.block_until_ready(y)

    y_ref = _reference(x, w1, b1, w2, b2)
    assert jnp.allclose(y, y_ref, atol=1e-5, rtol=1e-5), "mismatch vs JAX reference"

    print("KERNEL_OK")
</pallas_src>

<mosaic_0001>
module attributes {stable_mosaic.version = 11 : i64} {
  func.func @_pool_kernel(%arg0: i32, %arg1: i32, %arg2: i32, %arg3: memref<1x32x256xf32, #tpu.memory_space<vmem>>, %arg4: memref<1x32x1xf32, #tpu.memory_space<vmem>>, %arg5: memref<1x32x1xf32, #tpu.memory_space<vmem>>, %arg6: memref<32x128xf32, #tpu.memory_space<vmem>>, %arg7: memref<32x128xf32, #tpu.memory_space<vmem>>) attributes {dimension_semantics = [#tpu.dimension_semantics<parallel>, #tpu.dimension_semantics<parallel>, #tpu.dimension_semantics<arbitrary>], iteration_bounds = array<i64: 2, 1, 1>, scalar_prefetch = 0 : i64, scratch_operands = 2 : i64, tpu.core_type = #tpu.core_type<tc>, window_params = [{transform_indices = @transform_0, window_bounds = array<i64: 1, 32, 256>}, {transform_indices = @transform_1, window_bounds = array<i64: 1, 32, 1>}, {transform_indices = @transform_2, window_bounds = array<i64: 1, 32, 1>}]} {
    %c0_i32 = arith.constant 0 : i32
    %0 = arith.cmpi eq, %arg2, %c0_i32 : i32
    %1 = arith.extui %0 : i1 to i32
    %c0_i32_0 = arith.constant 0 : i32
    %2 = arith.cmpi ne, %1, %c0_i32_0 : i32
    scf.if %2 {
      %cst = arith.constant 0xFF800000 : f32
      %24 = vector.broadcast %cst : f32 to vector<32x128xf32>
      %c0_16 = arith.constant 0 : index
      %c0_17 = arith.constant 0 : index
      %25 = vector.load %arg6[%c0_16, %c0_17] : memref<32x128xf32, #tpu.memory_space<vmem>>, vector<32x128xf32>
      tpu.vector_store %arg6[%c0_16, %c0_17], %24 {strides = array<i32>} : memref<32x128xf32, #tpu.memory_space<vmem>>, vector<32x128xf32>,
      %cst_18 = arith.constant 0.000000e+00 : f32
      %26 = vector.broadcast %cst_18 : f32 to vector<32x128xf32>
      %c0_19 = arith.constant 0 : index
      %c0_20 = arith.constant 0 : index
      %27 = vector.load %arg7[%c0_19, %c0_20] : memref<32x128xf32, #tpu.memory_space<vmem>>, vector<32x128xf32>
      tpu.vector_store %arg7[%c0_19, %c0_20], %26 {strides = array<i32>} : memref<32x128xf32, #tpu.memory_space<vmem>>, vector<32x128xf32>,
    } else {
    }
    %c0 = arith.constant 0 : index
    %c0_1 = arith.constant 0 : index
    %3 = vector.load %arg6[%c0, %c0_1] : memref<32x128xf32, #tpu.memory_space<vmem>>, vector<32x128xf32>
    %c0_2 = arith.constant 0 : index
    %c0_3 = arith.constant 0 : index
    %4 = vector.load %arg7[%c0_2, %c0_3] : memref<32x128xf32, #tpu.memory_space<vmem>>, vector<32x128xf32>
    %c0_i32_4 = arith.constant 0 : i32
    %c128_i32 = arith.constant 128 : i32
    %5 = arith.muli %c0_i32_4, %c128_i32 : i32
    %6 = tpu.assume_multiple %5, 128 : i32
    %c0_5 = arith.constant 0 : index
    %c0_6 = arith.constant 0 : index
    %7 = arith.index_cast %6 : i32 to index
    %8 = vector.load %arg3[%c0_5, %c0_6, %7] : memref<1x32x256xf32, #tpu.memory_space<vmem>>, vector<1x32x128xf32>
    %9 = vector.shape_cast %8 : vector<1x32x128xf32> to vector<32x128xf32>
    %10 = arith.maximumf %3, %9 : vector<32x128xf32>
    %11 = arith.addf %4, %9 : vector<32x128xf32>
    %c1_i32 = arith.constant 1 : i32
    %c128_i32_7 = arith.constant 128 : i32
    %12 = arith.muli %c1_i32, %c128_i32_7 : i32
    %13 = tpu.assume_multiple %12, 128 : i32
    %c0_8 = arith.constant 0 : index
    %c0_9 = arith.constant 0 : index
    %14 = arith.index_cast %13 : i32 to index
    %15 = vector.load %arg3[%c0_8, %c0_9, %14] : memref<1x32x256xf32, #tpu.memory_space<vmem>>, vector<1x32x128xf32>
    %16 = vector.shape_cast %15 : vector<1x32x128xf32> to vector<32x128xf32>
    %17 = arith.maximumf %10, %16 : vector<32x128xf32>
    %18 = arith.addf %11, %16 : vector<32x128xf32>
    %c2_i32 = arith.constant 2 : i32
    %c0_10 = arith.constant 0 : index
    %c0_11 = arith.constant 0 : index
    %19 = vector.load %arg6[%c0_10, %c0_11] : memref<32x128xf32, #tpu.memory_space<vmem>>, vector<32x128xf32>
    tpu.vector_store %arg6[%c0_10, %c0_11], %17 {strides = array<i32>} : memref<32x128xf32, #tpu.memory_space<vmem>>, vector<32x128xf32>,
    %c0_12 = arith.constant 0 : index
    %c0_13 = arith.constant 0 : index
    %20 = vector.load %arg7[%c0_12, %c0_13] : memref<32x128xf32, #tpu.memory_space<vmem>>, vector<32x128xf32>
    tpu.vector_store %arg7[%c0_12, %c0_13], %18 {strides = array<i32>} : memref<32x128xf32, #tpu.memory_space<vmem>>, vector<32x128xf32>,
    %c0_i32_14 = arith.constant 0 : i32
    %21 = arith.cmpi eq, %arg2, %c0_i32_14 : i32
    %22 = arith.extui %21 : i1 to i32
    %c0_i32_15 = arith.constant 0 : i32
    %23 = arith.cmpi ne, %22, %c0_i32_15 : i32
    scf.if %23 {
      %c0_16 = arith.constant 0 : index
      %c0_17 = arith.constant 0 : index
      %24 = vector.load %arg6[%c0_16, %c0_17] : memref<32x128xf32, #tpu.memory_space<vmem>>, vector<32x128xf32>
      %cst = arith.constant dense<0xFF800000> : vector<32xf32>
      %25 = vector.multi_reduction <maximumf>, %24, %cst [1] : vector<32x128xf32> to vector<32xf32>
      %26 = vector.shape_cast %25 : vector<32xf32> to vector<32x1xf32>
      %27 = vector.shape_cast %26 : vector<32x1xf32> to vector<1x32x1xf32>
      %c0_18 = arith.constant 0 : index
      %c0_19 = arith.constant 0 : index
      %c0_20 = arith.constant 0 : index
      %28 = vector.load %arg4[%c0_18, %c0_19, %c0_20] : memref<1x32x1xf32, #tpu.memory_space<vmem>>, vector<1x32x1xf32>
      tpu.vector_store %arg4[%c0_18, %c0_19, %c0_20], %27 {strides = array<i32>} : memref<1x32x1xf32, #tpu.memory_space<vmem>>, vector<1x32x1xf32>,
      %c0_21 = arith.constant 0 : index
      %c0_22 = arith.constant 0 : index
      %29 = vector.load %arg7[%c0_21, %c0_22] : memref<32x128xf32, #tpu.memory_space<vmem>>, vector<32x128xf32>
      %cst_23 = arith.constant dense<0.000000e+00> : vector<32xf32>
      %30 = vector.multi_reduction <add>, %29, %cst_23 [1] : vector<32x128xf32> to vector<32xf32>
      %31 = vector.shape_cast %30 : vector<32xf32> to vector<32x1xf32>
      %32 = vector.shape_cast %31 : vector<32x1xf32> to vector<1x32x1xf32>
      %c0_24 = arith.constant 0 : index
      %c0_25 = arith.constant 0 : index
      %c0_26 = arith.constant 0 : index
      %33 = vector.load %arg5[%c0_24, %c0_25, %c0_26] : memref<1x32x1xf32, #tpu.memory_space<vmem>>, vector<1x32x1xf32>
      tpu.vector_store %arg5[%c0_24, %c0_25, %c0_26], %32 {strides = array<i32>} : memref<1x32x1xf32, #tpu.memory_space<vmem>>, vector<1x32x1xf32>,
    } else {
    }
    return
  }
  func.func @transform_0(%arg0: i32, %arg1: i32, %arg2: i32) -> (i32, i32, i32) {
    %c0_i32 = arith.constant 0 : i32
    return %arg0, %arg1, %arg2 : i32, i32, i32
  }
  func.func @transform_1(%arg0: i32, %arg1: i32, %arg2: i32) -> (i32, i32, i32) {
    %c0_i32 = arith.constant 0 : i32
    %c0_i32_0 = arith.constant 0 : i32
    return %arg0, %arg1, %c0_i32 : i32, i32, i32
  }
  func.func @transform_2(%arg0: i32, %arg1: i32, %arg2: i32) -> (i32, i32, i32) {
    %c0_i32 = arith.constant 0 : i32
    %c0_i32_0 = arith.constant 0 : i32
    return %arg0, %arg1, %c0_i32 : i32, i32, i32
  }
}

module attributes {stable_mosaic.version = 11 : i64} {
  func.func @_scale_kernel(%arg0: i32, %arg1: i32, %arg2: memref<1x32x256xf32, #tpu.memory_space<vmem>>, %arg3: memref<1x32x1xf32, #tpu.memory_space<vmem>>, %arg4: memref<1x32x256xf32, #tpu.memory_space<vmem>>) attributes {dimension_semantics = [#tpu.dimension_semantics<parallel>, #tpu.dimension_semantics<parallel>], iteration_bounds = array<i64: 2, 1>, scalar_prefetch = 0 : i64, scratch_operands = 0 : i64, tpu.core_type = #tpu.core_type<tc>, window_params = [{transform_indices = @transform_0, window_bounds = array<i64: 1, 32, 256>}, {transform_indices = @transform_1, window_bounds = array<i64: 1, 32, 1>}, {transform_indices = @transform_2, window_bounds = array<i64: 1, 32, 256>}]} {
    %c0 = arith.constant 0 : index
    %c0_0 = arith.constant 0 : index
    %c0_1 = arith.constant 0 : index
    %0 = vector.load %arg2[%c0, %c0_0, %c0_1] : memref<1x32x256xf32, #tpu.memory_space<vmem>>, vector<1x32x256xf32>
    %c0_2 = arith.constant 0 : index
    %c0_3 = arith.constant 0 : index
    %c0_4 = arith.constant 0 : index
    %1 = vector.load %arg3[%c0_2, %c0_3, %c0_4] : memref<1x32x1xf32, #tpu.memory_space<vmem>>, vector<1x32x1xf32>
    %2 = vector.broadcast %1 : vector<1x32x1xf32> to vector<1x32x256xf32>
    %3 = arith.mulf %0, %2 : vector<1x32x256xf32>
    %c0_5 = arith.constant 0 : index
    %c0_6 = arith.constant 0 : index
    %c0_7 = arith.constant 0 : index
    %4 = vector.load %arg4[%c0_5, %c0_6, %c0_7] : memref<1x32x256xf32, #tpu.memory_space<vmem>>, vector<1x32x256xf32>
    tpu.vector_store %arg4[%c0_5, %c0_6, %c0_7], %3 {strides = array<i32>} : memref<1x32x256xf32, #tpu.memory_space<vmem>>, vector<1x32x256xf32>,
    return
  }
  func.func @transform_0(%arg0: i32, %arg1: i32) -> (i32, i32, i32) {
    %c0_i32 = arith.constant 0 : i32
    %c0_i32_0 = arith.constant 0 : i32
    return %arg0, %c0_i32, %arg1 : i32, i32, i32
  }
  func.func @transform_1(%arg0: i32, %arg1: i32) -> (i32, i32, i32) {
    %c0_i32 = arith.constant 0 : i32
    %c0_i32_0 = arith.constant 0 : i32
    %c0_i32_1 = arith.constant 0 : i32
    return %arg0, %c0_i32, %c0_i32_0 : i32, i32, i32
  }
  func.func @transform_2(%arg0: i32, %arg1: i32) -> (i32, i32, i32) {
    %c0_i32 = arith.constant 0 : i32
    %c0_i32_0 = arith.constant 0 : i32
    return %arg0, %c0_i32, %arg1 : i32, i32, i32
  }
}

</mosaic_0001>

<bundles_post_ra>
// kernel: gl_channel_attention.2
= control target key start
LH: loop header
LB: loop body
LE: loop exit
PB: predicated region body
PF: predicated region fallthrough
CT: control target
= control target key end

     0   :  { %s551_s9 = smov 0   ;;  %s553_s10 = smov 0   ;;  %s599_s0 = inlined_call_operand.vmem [shape: f32[2,32,256], index: 0, kind: input, shape index: {}]   ;;  %s600_s1 = inlined_call_operand.vmem [shape: f32[2,32,1], index: 1, kind: output, shape index: {0}]   ;;  %s601_s2 = inlined_call_operand.vmem [shape: f32[2,32,1], index: 2, kind: output, shape index: {1}]  }
   0x1   :  { %s555_s11 = smov 0  }
   0x2 LB: > { %s32_s12 = sadd.s32 1, %s530_s10  ;;  %p472_p0 = scmp.ge.s32.totalorder %s534_s11, 1  ;;  %s534_s11 = sphi %s555_s11, %s13_s11   ;;  %s530_s10 = sphi %s553_s10, %s603_s10   ;;  %s526_s9 = sphi %s551_s9, %s602_s9  }
   0x3   : > { %p34_p1 = scmp.ge.s32.totalorder %s32_s12, 2  ;;  %p153_p2 = scmp.lt.s32.totalorder %s534_s11, 3 }
   0x5   : > { %s605_s12 = smov (%p34_p1, %s32_s12), 0  ;;  %p154_p3 = pnand %p472_p0, %p153_p2 }
   0x6   : > { %p199_p4 = scmp.lt.s32.totalorder (!%p154_p3), %s526_s9, 1 }
   0x7   : > { %157 = sbr.rel (%p154_p3) target bundleno = 152 (0x98), region = 24 }
   0xc   : > { %s607_s9 = smov (!%p199_p4, %s526_s9), 1  ;;  %vm301_vm0 = vcmask 7168  }
   0xd   : > { %s485_s13 = sshll.u32 %s607_s9, 6  ;;  %s486_s17 = sshll.u32 %s607_s9, 5 }
   0xe   : > { %s210_s16 = scalar_lea.vmem %s599_s0, %s485_s13  ;;  %s221_s20 = scalar_lea.vmem %s600_s1, %s486_s17 }
   0xf   : > { %v255_v0 = vld [vmem:[%s210_s16 + $0x20] sm:$0xff]  ;;  %v481_v1 = vld [vmem:[%s210_s16 + $0x28] sm:$0xff]  ;;  %v256_v7 = vld [vmem:[%s210_s16 + $0x30] sm:$0xff]  ;;  %s231_s23 = scalar_lea.vmem %s601_s2, %s486_s17 }
  0x10   : > { %v253_v2 = vld [vmem:[%s210_s16] sm:$0xff]  ;;  %v272_v3 = vmax.f32 %v255_v0, %v481_v1  ;;  %v479_v4 = vld [vmem:[%s210_s16 + $0x8] sm:$0xff]  ;;  %v482_v8 = vld [vmem:[%s210_s16 + $0x38] sm:$0xff]  ;;  %v276_v15 = vadd.f32 %v481_v1, %v255_v0 }
  0x11   : > { %v270_v5 = vmax.f32 %v253_v2, %v479_v4  ;;  %v274_v6 = vadd.f32 %v479_v4, %v253_v2  ;;  %v254_v9 = vld [vmem:[%s210_s16 + $0x10] sm:$0xff]  ;;  %v480_v10 = vld [vmem:[%s210_s16 + $0x18] sm:$0xff]  ;;  %v273_v11 = vmax.f32 %v256_v7, %v482_v8  ;;  %v277_v14 = vadd.f32 %v482_v8, %v256_v7 }
  0x12   : > { %297 = vmax.xlane.f32.xlu1 %v272_v3  ;;  %v271_v12 = vmax.f32 %v254_v9, %v480_v10  ;;  %v275_v13 = vadd.f32 %v480_v10, %v254_v9 }
  0x13   : > { %293 = vmax.xlane.f32.xlu0 %v270_v5  ;;  %310 = vadd.xlane.f32.xlu2 %v274_v6 }
  0x1a   : > { %299 = vmax.xlane.f32.xlu1 %v273_v11 }
  0x1b   : > { %295 = vmax.xlane.f32.xlu0 %v271_v12  ;;  %312 = vadd.xlane.f32.xlu2 %v275_v13 }
  0x22   : > { %316 = vadd.xlane.f32.xlu1 %v277_v14 }
  0x23   : > { %314 = vadd.xlane.f32.xlu0 %v276_v15 }
  0x85   : > { %v298_v16 = vpop.xlane.xlu1 %297 }
  0x86   : > { %304 = vst.msk [vmem:[%s221_s20 + $0x10] sm:$0xff] %vm301_vm0, %v298_v16  ;;  %v294_v17 = vpop.xlane.xlu0 %293  ;;  %v311_v18 = vpop.xlane.xlu2 %310 }
  0x87   : > { %302 = vst.msk [vmem:[%s221_s20] sm:$0xff] %vm301_vm0, %v294_v17 }
  0x88   : > { %318 = vst.msk [vmem:[%s231_s23] sm:$0xff] %vm301_vm0, %v311_v18 }
  0x8d   : > { %v300_v19 = vpop.xlane.xlu1 %299 }
  0x8e   : > { %305 = vst.msk [vmem:[%s221_s20 + $0x18] sm:$0xff] %vm301_vm0, %v300_v19  ;;  %v296_v20 = vpop.xlane.xlu0 %295  ;;  %v313_v21 = vpop.xlane.xlu2 %312 }
  0x8f   : > { %303 = vst.msk [vmem:[%s221_s20 + $0x8] sm:$0xff] %vm301_vm0, %v296_v20 }
  0x90   : > { %319 = vst.msk [vmem:[%s231_s23 + $0x8] sm:$0xff] %vm301_vm0, %v313_v21 }
  0x95   : > { %v317_v22 = vpop.xlane.xlu1 %316 }
  0x96   : > { %321 = vst.msk [vmem:[%s231_s23 + $0x18] sm:$0xff] %vm301_vm0, %v317_v22  ;;  %v315_v23 = vpop.xlane.xlu0 %314 }
  0x97   : > { %320 = vst.msk [vmem:[%s231_s23 + $0x10] sm:$0xff] %vm301_vm0, %v315_v23 }
  0x98 PF: > { %s13_s11 = sadd.s32 1, %s534_s11   ;;  %s602_s9 = smov %s530_s10 }
  0x99   : > { %p10_p5 = scmp.ge.s32.totalorder %s13_s11, 4   ;;  %s603_s10 = smov %s605_s12 }
  0x9b   :  { %12 = sbr.rel (!%p10_p5) target bundleno = 2 (0x2), region = 75 }

// kernel: gl_channel_attention.3
= control target key start
LH: loop header
LB: loop body
LE: loop exit
PB: predicated region body
PF: predicated region fallthrough
CT: control target
= control target key end

     0   :  { %s433_s9 = smov 0   ;;  %s435_s10 = smov 0   ;;  %s469_s0 = inlined_call_operand.vmem [shape: f32[2,32,256], index: 0, kind: input, shape index: {}]   ;;  %s470_s1 = inlined_call_operand.vmem [shape: f32[2,32,1], index: 1, kind: input, shape index: {}]   ;;  %s471_s2 = inlined_call_operand.vmem [shape: f32[2,32,256], index: 2, kind: output, shape index: {}]  }
   0x1   :  { %s437_s11 = smov 0  }
   0x2 LB: > { %s24_s12 = sadd.s32 1, %s411_s10  ;;  %p354_p0 = scmp.ge.s32.totalorder %s415_s11, 1  ;;  %s415_s11 = sphi %s437_s11, %s12_s11   ;;  %s411_s10 = sphi %s435_s10, %s473_s10   ;;  %s407_s9 = sphi %s433_s9, %s472_s9  }
   0x3   : > { %p26_p1 = scmp.ge.s32.totalorder %s24_s12, 2  ;;  %p143_p2 = scmp.lt.s32.totalorder %s415_s11, 3 }
   0x5   : > { %s475_s12 = smov (%p26_p1, %s24_s12), 0  ;;  %p144_p3 = pnand %p354_p0, %p143_p2 }
   0x6   : > { %p179_p4 = scmp.lt.s32.totalorder (!%p144_p3), %s407_s9, 1 }
   0x7   : > { %147 = sbr.rel (%p144_p3) target bundleno = 145 (0x91), region = 28 }
   0xc   : > { %v417_v0 = vmov 0   ;;  %s477_s9 = smov (!%p179_p4, %s407_s9), 1 }
   0xd   : > { %392 = vset.pattern.permute.xlu1 %v417_v0  ;;  %391 = vset.pattern.permute.xlu0 %v417_v0  ;;  %s364_s13 = sshll.u32 %s477_s9, 5  ;;  %s363_s17 = sshll.u32 %s477_s9, 6 }
   0xe   : > { %s192_s16 = scalar_lea.vmem %s470_s1, %s364_s13  ;;  %s186_s20 = scalar_lea.vmem %s469_s0, %s363_s17 }
   0xf   : > { %v213_v1 = vld [vmem:[%s192_s16 + $0x10] sm:$0xff]  ;;  %v211_v2 = vld [vmem:[%s192_s16] sm:$0xff]  ;;  %v214_v3 = vld [vmem:[%s192_s16 + $0x18] sm:$0xff]  ;;  %s201_s23 = scalar_lea.vmem %s471_s2, %s363_s17 }
  0x10   : > { %227 = vperm.xlu1 %392, %v213_v1   ;;  %217 = vperm.xlu0 %391, %v211_v2   ;;  %v212_v4 = vld [vmem:[%s192_s16 + $0x8] sm:$0xff]  ;;  %v207_v5 = vld [vmem:[%s186_s20 + $0x20] sm:$0xff]  ;;  %v209_v15 = vld [vmem:[%s186_s20 + $0x30] sm:$0xff] }
  0x11   : > { %v208_v6 = vld [vmem:[%s186_s20 + $0x28] sm:$0xff]  ;;  %v203_v7 = vld [vmem:[%s186_s20] sm:$0xff]  ;;  %v210_v16 = vld [vmem:[%s186_s20 + $0x38] sm:$0xff] }
  0x12   : > { %v204_v8 = vld [vmem:[%s186_s20 + $0x8] sm:$0xff]  ;;  %v205_v17 = vld [vmem:[%s186_s20 + $0x10] sm:$0xff]  ;;  %v206_v18 = vld [vmem:[%s186_s20 + $0x18] sm:$0xff] }
  0x18   : > { %232 = vperm.xlu1 %392, %v214_v3   ;;  %222 = vperm.xlu0 %391, %v212_v4  }
  0x82   : > { %v228_v9 = vpop.permute.xlu1 %227  ;;  %v218_v10 = vpop.permute.xlu0 %217 }
  0x83   : > { %v239_v11 = vmul.f32 %v228_v9, %v207_v5  ;;  %v240_v12 = vmul.f32 %v228_v9, %v208_v6  ;;  %v235_v13 = vmul.f32 %v218_v10, %v203_v7  ;;  %v236_v14 = vmul.f32 %v218_v10, %v204_v8 }
  0x85   : > { %247 = vst [vmem:[%s201_s23 + $0x20] sm:$0xff] %v239_v11 }
  0x86   : > { %248 = vst [vmem:[%s201_s23 + $0x28] sm:$0xff] %v240_v12 }
  0x87   : > { %243 = vst [vmem:[%s201_s23] sm:$0xff] %v235_v13 }
  0x88   : > { %244 = vst [vmem:[%s201_s23 + $0x8] sm:$0xff] %v236_v14 }
  0x8a   : > { %v233_v19 = vpop.permute.xlu1 %232  ;;  %v223_v20 = vpop.permute.xlu0 %222 }
  0x8b   : > { %v241_v21 = vmul.f32 %v233_v19, %v209_v15  ;;  %v242_v22 = vmul.f32 %v233_v19, %v210_v16  ;;  %v237_v23 = vmul.f32 %v223_v20, %v205_v17  ;;  %v238_v24 = vmul.f32 %v223_v20, %v206_v18 }
  0x8d   : > { %249 = vst [vmem:[%s201_s23 + $0x30] sm:$0xff] %v241_v21 }
  0x8e   : > { %250 = vst [vmem:[%s201_s23 + $0x38] sm:$0xff] %v242_v22 }
  0x8f   : > { %245 = vst [vmem:[%s201_s23 + $0x10] sm:$0xff] %v237_v23 }
  0x90   : > { %246 = vst [vmem:[%s201_s23 + $0x18] sm:$0xff] %v238_v24 }
  0x91 PF: > { %s12_s11 = sadd.s32 1, %s415_s11   ;;  %s472_s9 = smov %s411_s10 }
  0x92   : > { %p9_p5 = scmp.ge.s32.totalorder %s12_s11, 4   ;;  %s473_s10 = smov %s475_s12 }
  0x94   :  { %11 = sbr.rel (!%p9_p5) target bundleno = 2 (0x2), region = 61 }

</bundles_post_ra>
